<compile_context>
chip_gen: v7x
topology: tpu7x:2x2x1
jax: 0.10.0
libtpu: 0.0.40
codegen_flags: <defaults>
</compile_context>

<pallas_src>
import functools

import jax
import jax.numpy as jnp
import numpy as np
from jax.experimental import pallas as pl
from jax.experimental.pallas import tpu as pltpu

_SQRT_2_OVER_PI = 0.7978845608028654
_LANE = 128


# ----------------------------- kernel helpers ------------------------------ #
def _gelu_tanh(x):
    # MHGRN's GELU: 0.5 * x * (1 + tanh(sqrt(2/pi) * (x + 0.044715 x^3)))
    return 0.5 * x * (1.0 + jnp.tanh(_SQRT_2_OVER_PI * (x + 0.044715 * x * x * x)))


# --------------------------------- kernel ---------------------------------- #
def _path_attention_kernel(
    n_type, n_head, att_dim, n_node,
    # inputs (all transposed: batch on the lane axis)
    st_ref,      # (sent_dim, tb)
    ntt_ref,     # (n_node, tb) int32
    w0t_ref,     # (3*att_dim, sent_dim)  rows: [start | end | uni]
    ln_ref,      # (3*att_dim, 3)         cols: [b0 | gamma | beta]
    w1s_ref,     # (n_type, att_dim)
    w1e_ref,     # (n_type, att_dim)
    w1u_ref,     # (n_head, att_dim)
    b1_ref,      # (2*n_type + n_head, 1) rows: [start | end | uni]
    # output (packed, lane-dense): rows [start (n_node) | end (n_node) | uni (n_head)]
    out_ref,     # (2*n_node + n_head, tb)
):
    st = st_ref[...]                       # (sent_dim, tb)
    nt = ntt_ref[...]                      # (n_node, tb) int32

    b0 = ln_ref[:, 0:1]                    # (3*att_dim, 1)
    gamma = ln_ref[:, 1:2]
    beta = ln_ref[:, 2:3]

    # ---- fused first Linear: W0^T @ S^T, MXU N-dim = tb (lane-dense) -------
    h = jnp.dot(w0t_ref[...], st, preferred_element_type=jnp.float32)  # (3*att_dim, tb)
    h = h + b0

    # ---- per-branch LayerNorm + GELU + narrow second Linear -----------------
    # Branch b occupies sublane rows [b*att_dim, (b+1)*att_dim) -> tile-aligned.
    w1_refs = (w1s_ref, w1e_ref, w1u_ref)
    out_dims = (n_type, n_type, n_head)
    branch_vals = []
    b1_off = 0
    for b in range(3):
        lo = b * att_dim
        hb = h[lo:lo + att_dim, :]                                     # (att_dim, tb)
        mu = jnp.mean(hb, axis=0, keepdims=True)                       # (1, tb)
        c = hb - mu
        var = jnp.mean(c * c, axis=0, keepdims=True)
        hb = c * jax.lax.rsqrt(var + 1e-5)
        hb = hb * gamma[lo:lo + att_dim, :] + beta[lo:lo + att_dim, :]
        act = _gelu_tanh(hb)                                           # (att_dim, tb)

        d = out_dims[b]
        logits = jnp.dot(w1_refs[b][...], act,
                         preferred_element_type=jnp.float32)           # (d, tb)
        logits = logits + b1_ref[b1_off:b1_off + d, :]
        b1_off += d
        # torch.exp(x - x.max(type_axis, keepdim=True))
        branch_vals.append(jnp.exp(logits - jnp.max(logits, axis=0, keepdims=True)))

    start_vals, end_vals, uni_vals = branch_vals                       # (n_type|n_head, tb)

    # ---- gather by node_type; masks computed once, shared by start & end ---
    start_g = jnp.zeros(nt.shape, dtype=jnp.float32)                   # (n_node, tb)
    end_g = jnp.zeros(nt.shape, dtype=jnp.float32)
    for t in range(n_type):                 # n_type is a small static constant
        m = nt == t
        start_g = jnp.where(m, start_vals[t:t + 1, :], start_g)
        end_g = jnp.where(m, end_vals[t:t + 1, :], end_g)

    # ---- direct, lane-dense slice stores (no concat) ------------------------
    out_ref[0:n_node, :] = start_g
    out_ref[n_node:2 * n_node, :] = end_g
    out_ref[2 * n_node:2 * n_node + n_head, :] = uni_vals


# ------------------------------ param packing ------------------------------- #
def _pack_params(params, n_type, n_head, att_dim):
    # Fused, transposed first-layer weight: (3*att_dim, sent_dim)
    w0t = jnp.concatenate(
        [params["start_w0"].T, params["end_w0"].T, params["uni_w0"].T], axis=0)

    def _col(suffix):
        row = jnp.concatenate(
            [params[f"start_{suffix}"], params[f"end_{suffix}"], params[f"uni_{suffix}"]],
            axis=1)                                   # (1, 3*att_dim)
        return row.reshape(3 * att_dim, 1)

    ln_pack = jnp.concatenate([_col("b0"), _col("gamma"), _col("beta")], axis=1)  # (3*att_dim, 3)

    # Per-branch second-layer weights (no zero-padded block diagonal).
    w1s_t = params["start_w1"].T                      # (n_type, att_dim)
    w1e_t = params["end_w1"].T                        # (n_type, att_dim)
    w1u_t = params["uni_w1"].T                        # (n_head, att_dim)
    b1_pack = jnp.concatenate(
        [params["start_b1"], params["end_b1"], params["uni_b1"]], axis=1
    ).reshape(2 * n_type + n_head, 1)
    return w0t, ln_pack, w1s_t, w1e_t, w1u_t, b1_pack


# --------------------------------- wrapper ---------------------------------- #
def path_attention_layer(S, node_type, params, *, n_type, n_head,
                         block_rows=2048, use_bf16_matmul=False):
    bs, sent_dim = S.shape
    _, n_node = node_type.shape
    att_dim = params["start_w0"].shape[1]
    packed_dim = 2 * n_node + n_head

    w0t, ln_pack, w1s_t, w1e_t, w1u_t, b1_pack = _pack_params(
        params, n_type, n_head, att_dim)

    # Transposed activations: batch on the lane axis (layout plumbing in XLA).
    st = S.T                                          # (sent_dim, bs)
    ntt = node_type.T.astype(jnp.int32)               # (n_node, bs)
    if use_bf16_matmul:
        # HBM-traffic saver (mainly v5e); keep LN/GELU/softmax math in f32.
        st = st.astype(jnp.bfloat16)
        w0t = w0t.astype(jnp.bfloat16)

    # Batch tile selection: lane-dense (multiple of 128) tiles, >= 2 grid steps
    # for large batches (v7x dual-TC), no padding -- ragged last block is
    # handled by Pallas (OOB reads undefined, OOB writes dropped).
    if bs <= 2 * _LANE:
        tb = bs                                       # single block == full dim
    else:
        tb = min(block_rows, ((bs + 2 * _LANE - 1) // (2 * _LANE)) * _LANE)
        tb = max(tb, _LANE)
    grid = (pl.cdiv(bs, tb),)

    kernel = functools.partial(_path_attention_kernel, n_type, n_head, att_dim, n_node)

    # VMEM budget (double-buffered blocked arrays + resident params + headroom),
    # capped at 64 MiB so it is always safe on v7x.
    step_bytes = 4 * tb * (sent_dim + n_node + packed_dim)
    param_bytes = 4 * int(w0t.size + ln_pack.size + w1s_t.size
                          + w1e_t.size + w1u_t.size + b1_pack.size)
    vmem_limit = int(min(64 * 2 ** 20, max(32 * 2 ** 20, 8 * step_bytes + 4 * param_bytes)))

    cost = pl.CostEstimate(
        flops=int(2 * bs * sent_dim * 3 * att_dim
                  + 2 * bs * att_dim * (2 * n_type + n_head)),
        transcendentals=int(bs * (3 * att_dim + 2 * n_type + n_head)),
        bytes_accessed=int(4 * bs * (sent_dim + n_node + packed_dim) + param_bytes),
    )

    packed = pl.pallas_call(
        kernel,
        out_shape=jax.ShapeDtypeStruct((packed_dim, bs), jnp.float32),
        grid_spec=pltpu.PrefetchScalarGridSpec(
            num_scalar_prefetch=0,
            grid=grid,
            in_specs=[
                pl.BlockSpec((sent_dim, tb), lambda i: (0, i)),   # S^T (blocked on lanes)
                pl.BlockSpec((n_node, tb), lambda i: (0, i)),     # node_type^T (blocked)
                pl.BlockSpec(w0t.shape, lambda i: (0, 0)),        # fused W0^T (resident)
                pl.BlockSpec(ln_pack.shape, lambda i: (0, 0)),    # b0/gamma/beta (resident)
                pl.BlockSpec(w1s_t.shape, lambda i: (0, 0)),      # start W1^T (resident)
                pl.BlockSpec(w1e_t.shape, lambda i: (0, 0)),      # end W1^T (resident)
                pl.BlockSpec(w1u_t.shape, lambda i: (0, 0)),      # uni W1^T (resident)
                pl.BlockSpec(b1_pack.shape, lambda i: (0, 0)),    # fused b1 (resident)
            ],
            out_specs=pl.BlockSpec((packed_dim, tb), lambda i: (0, i)),
        ),
        compiler_params=pltpu.CompilerParams(
            dimension_semantics=("parallel",),
            vmem_limit_bytes=vmem_limit,
        ),
        cost_estimate=cost,
    )(st, ntt, w0t, ln_pack, w1s_t, w1e_t, w1u_t, b1_pack)

    start = packed[:n_node, :].T                       # (bs, n_node)
    end = packed[n_node:2 * n_node, :].T               # (bs, n_node)
    uni = packed[2 * n_node:2 * n_node + n_head, :].T  # (bs, n_head)

    # trans_attn is batch-independent: compute exp(x - max) once on the
    # (1, n_head^2) row in XLA and broadcast (no per-batch kernel work).
    ts = params["trans_scores"]
    trans_row = jnp.exp(ts - jnp.max(ts, axis=-1, keepdims=True))
    trans = jnp.broadcast_to(trans_row, (bs, n_head * n_head)).reshape(bs, n_head, n_head)

    return start, end, uni, trans


# ------------------------- plain-JAX reference (check) ---------------------- #
def _reference(S, node_type, params, *, n_type, n_head):
    def mlp(prefix):
        h = S @ params[f"{prefix}_w0"] + params[f"{prefix}_b0"]
        mu = h.mean(-1, keepdims=True)
        var = ((h - mu) ** 2).mean(-1, keepdims=True)
        h = (h - mu) / jnp.sqrt(var + 1e-5) * params[f"{prefix}_gamma"] + params[f"{prefix}_beta"]
        h = 0.5 * h * (1.0 + jnp.tanh(_SQRT_2_OVER_PI * (h + 0.044715 * h**3)))
        return h @ params[f"{prefix}_w1"] + params[f"{prefix}_b1"]

    def numer(x):
        return jnp.exp(x - jnp.max(x, axis=-1, keepdims=True))

    bs, n_node = node_type.shape
    start_vals = numer(mlp("start"))
    end_vals = numer(mlp("end"))
    start = jnp.take_along_axis(start_vals, node_type, axis=1)
    end = jnp.take_along_axis(end_vals, node_type, axis=1)
    uni = numer(mlp("uni"))
    trans = jnp.broadcast_to(params["trans_scores"], (bs, n_head * n_head))
    trans = numer(trans).reshape(bs, n_head, n_head)
    return start, end, uni, trans


# ------------------------------ parameter init ------------------------------ #
def init_params(key, sent_dim, att_dim, n_type, n_head):
    params = {}

    def mlp_params(k, prefix, out_dim):
        k0, k1, k2, k3 = jax.random.split(k, 4)
        params[f"{prefix}_w0"] = 0.1 * jax.random.normal(k0, (sent_dim, att_dim), jnp.float32)
        params[f"{prefix}_b0"] = 0.1 * jax.random.normal(k1, (1, att_dim), jnp.float32)
        params[f"{prefix}_gamma"] = jnp.ones((1, att_dim), jnp.float32)   # nn.LayerNorm init
        params[f"{prefix}_beta"] = jnp.zeros((1, att_dim), jnp.float32)
        params[f"{prefix}_w1"] = 0.1 * jax.random.normal(k2, (att_dim, out_dim), jnp.float32)
        params[f"{prefix}_b1"] = 0.1 * jax.random.normal(k3, (1, out_dim), jnp.float32)

    ks, ke, ku, kt = jax.random.split(key, 4)
    mlp_params(ks, "start", n_type)
    mlp_params(ke, "end", n_type)
    mlp_params(ku, "uni", n_head)
    # __init__ uses torch.zeros(n_head**2); use a deterministic non-zero ramp so
    # the exp(x - max) path is exercised (semantics unchanged).
    params["trans_scores"] = (
        0.05 * jnp.arange(n_head * n_head, dtype=jnp.float32).reshape(1, n_head * n_head)
    )
    return params


# ----------------------------------- main ----------------------------------- #
if __name__ == "__main__":
    bs, sent_dim, att_dim = 2, 32, 32
    n_type, n_head, n_node = 4, 4, 8
    # TODO(synk): kernel hard-codes att_layer_num=1 MLPs and the default
    # ablation=[] path (no q2a_only / ctx_trans / no_* branches).

    key = jax.random.PRNGKey(0)
    k_s, k_nt, k_p = jax.random.split(key, 3)

    S = jax.random.normal(k_s, (bs, sent_dim), jnp.float32)
    node_type = jax.random.randint(k_nt, (bs, n_node), 0, n_type, dtype=jnp.int32)
    params = init_params(k_p, sent_dim, att_dim, n_type, n_head)

    outs = path_attention_layer(S, node_type, params, n_type=n_type, n_head=n_head)
    outs = jax.block_until_ready(outs)

    refs = _reference(S, node_type, params, n_type=n_type, n_head=n_head)
    for o, r, name in zip(outs, refs, ("start_attn", "end_attn", "uni_attn", "trans_attn")):
        np.testing.assert_allclose(np.asarray(o), np.asarray(r), rtol=1e-5, atol=1e-5,
                                   err_msg=f"mismatch in {name}")

    print("KERNEL_OK")
</pallas_src>

<mosaic_0001>
module attributes {stable_mosaic.version = 11 : i64} {
  func.func @_path_attention_kernel(%arg0: i32, %arg1: memref<32x2xf32, #tpu.memory_space<vmem>>, %arg2: memref<8x2xi32, #tpu.memory_space<vmem>>, %arg3: memref<96x32xf32, #tpu.memory_space<vmem>>, %arg4: memref<96x3xf32, #tpu.memory_space<vmem>>, %arg5: memref<4x32xf32, #tpu.memory_space<vmem>>, %arg6: memref<4x32xf32, #tpu.memory_space<vmem>>, %arg7: memref<4x32xf32, #tpu.memory_space<vmem>>, %arg8: memref<12x1xf32, #tpu.memory_space<vmem>>, %arg9: memref<20x2xf32, #tpu.memory_space<vmem>>) attributes {dimension_semantics = [#tpu.dimension_semantics<parallel>], iteration_bounds = array<i64: 1>, scalar_prefetch = 0 : i64, scratch_operands = 0 : i64, tpu.core_type = #tpu.core_type<tc>, window_params = [{transform_indices = @transform_0, window_bounds = array<i64: 32, 2>}, {transform_indices = @transform_1, window_bounds = array<i64: 8, 2>}, {pipeline_mode = #tpu.pipeline_mode<synchronous>, transform_indices = @transform_2, window_bounds = array<i64: 96, 32>}, {pipeline_mode = #tpu.pipeline_mode<synchronous>, transform_indices = @transform_3, window_bounds = array<i64: 96, 3>}, {pipeline_mode = #tpu.pipeline_mode<synchronous>, transform_indices = @transform_4, window_bounds = array<i64: 4, 32>}, {pipeline_mode = #tpu.pipeline_mode<synchronous>, transform_indices = @transform_5, window_bounds = array<i64: 4, 32>}, {pipeline_mode = #tpu.pipeline_mode<synchronous>, transform_indices = @transform_6, window_bounds = array<i64: 4, 32>}, {pipeline_mode = #tpu.pipeline_mode<synchronous>, transform_indices = @transform_7, window_bounds = array<i64: 12, 1>}, {transform_indices = @transform_8, window_bounds = array<i64: 20, 2>}]} {
    %c0 = arith.constant 0 : index
    %c0_0 = arith.constant 0 : index
    %0 = vector.load %arg1[%c0, %c0_0] : memref<32x2xf32, #tpu.memory_space<vmem>>, vector<32x2xf32>
    %c0_1 = arith.constant 0 : index
    %c0_2 = arith.constant 0 : index
    %1 = vector.load %arg2[%c0_1, %c0_2] : memref<8x2xi32, #tpu.memory_space<vmem>>, vector<8x2xi32>
    %c0_3 = arith.constant 0 : index
    %c0_4 = arith.constant 0 : index
    %2 = vector.load %arg4[%c0_3, %c0_4] : memref<96x3xf32, #tpu.memory_space<vmem>>, vector<96x1xf32>
    %c0_5 = arith.constant 0 : index
    %c1 = arith.constant 1 : index
    %3 = vector.load %arg4[%c0_5, %c1] : memref<96x3xf32, #tpu.memory_space<vmem>>, vector<96x1xf32>
    %c0_6 = arith.constant 0 : index
    %c2 = arith.constant 2 : index
    %4 = vector.load %arg4[%c0_6, %c2] : memref<96x3xf32, #tpu.memory_space<vmem>>, vector<96x1xf32>
    %c0_7 = arith.constant 0 : index
    %c0_8 = arith.constant 0 : index
    %5 = vector.load %arg3[%c0_7, %c0_8] : memref<96x32xf32, #tpu.memory_space<vmem>>, vector<96x32xf32>
    %cst = arith.constant dense<0.000000e+00> : vector<96x2xf32>
    %6 = tpu.matmul %5, %0, %cst {dimension_numbers = #tpu.dot_dimension_numbers<[1], [0], [0], [1], [0, 0, 1, 1], [], []>} : vector<96x32xf32>, vector<32x2xf32>, vector<96x2xf32> -> vector<96x2xf32>
    %7 = vector.broadcast %2 : vector<96x1xf32> to vector<96x2xf32>
    %8 = arith.addf %6, %7 : vector<96x2xf32>
    %9 = vector.extract_strided_slice %8 {offsets = [0, 0], sizes = [32, 2], strides = [1, 1]} : vector<96x2xf32> to vector<32x2xf32>
    %cst_9 = arith.constant dense<0.000000e+00> : vector<2xf32>
    %10 = vector.multi_reduction <add>, %9, %cst_9 [0] : vector<32x2xf32> to vector<2xf32>
    %11 = vector.shape_cast %10 : vector<2xf32> to vector<1x2xf32>
    %cst_10 = arith.constant 3.200000e+01 : f32
    %12 = vector.broadcast %cst_10 : f32 to vector<1x2xf32>
    %13 = arith.divf %11, %12 : vector<1x2xf32>
    %14 = vector.broadcast %13 : vector<1x2xf32> to vector<32x2xf32>
    %15 = arith.subf %9, %14 : vector<32x2xf32>
    %16 = arith.mulf %15, %15 : vector<32x2xf32>
    %cst_11 = arith.constant dense<0.000000e+00> : vector<2xf32>
    %17 = vector.multi_reduction <add>, %16, %cst_11 [0] : vector<32x2xf32> to vector<2xf32>
    %18 = vector.shape_cast %17 : vector<2xf32> to vector<1x2xf32>
    %cst_12 = arith.constant 3.200000e+01 : f32
    %19 = vector.broadcast %cst_12 : f32 to vector<1x2xf32>
    %20 = arith.divf %18, %19 : vector<1x2xf32>
    %cst_13 = arith.constant 9.99999974E-6 : f32
    %21 = vector.broadcast %cst_13 : f32 to vector<1x2xf32>
    %22 = arith.addf %20, %21 : vector<1x2xf32>
    %23 = math.rsqrt %22 : vector<1x2xf32>
    %24 = vector.broadcast %23 : vector<1x2xf32> to vector<32x2xf32>
    %25 = arith.mulf %15, %24 : vector<32x2xf32>
    %26 = vector.extract_strided_slice %3 {offsets = [0, 0], sizes = [32, 1], strides = [1, 1]} : vector<96x1xf32> to vector<32x1xf32>
    %27 = vector.broadcast %26 : vector<32x1xf32> to vector<32x2xf32>
    %28 = arith.mulf %25, %27 : vector<32x2xf32>
    %29 = vector.extract_strided_slice %4 {offsets = [0, 0], sizes = [32, 1], strides = [1, 1]} : vector<96x1xf32> to vector<32x1xf32>
    %30 = vector.broadcast %29 : vector<32x1xf32> to vector<32x2xf32>
    %31 = arith.addf %28, %30 : vector<32x2xf32>
    %cst_14 = arith.constant 5.000000e-01 : f32
    %32 = vector.broadcast %cst_14 : f32 to vector<32x2xf32>
    %33 = arith.mulf %32, %31 : vector<32x2xf32>
    %cst_15 = arith.constant 4.471500e-02 : f32
    %34 = vector.broadcast %cst_15 : f32 to vector<32x2xf32>
    %35 = arith.mulf %34, %31 : vector<32x2xf32>
    %36 = arith.mulf %35, %31 : vector<32x2xf32>
    %37 = arith.mulf %36, %31 : vector<32x2xf32>
    %38 = arith.addf %31, %37 : vector<32x2xf32>
    %cst_16 = arith.constant 0.797884583 : f32
    %39 = vector.broadcast %cst_16 : f32 to vector<32x2xf32>
    %40 = arith.mulf %39, %38 : vector<32x2xf32>
    %41 = math.tanh %40 : vector<32x2xf32>
    %cst_17 = arith.constant 1.000000e+00 : f32
    %42 = vector.broadcast %cst_17 : f32 to vector<32x2xf32>
    %43 = arith.addf %42, %41 : vector<32x2xf32>
    %44 = arith.mulf %33, %43 : vector<32x2xf32>
    %c0_18 = arith.constant 0 : index
    %c0_19 = arith.constant 0 : index
    %45 = vector.load %arg5[%c0_18, %c0_19] : memref<4x32xf32, #tpu.memory_space<vmem>>, vector<4x32xf32>
    %cst_20 = arith.constant dense<0.000000e+00> : vector<4x2xf32>
    %46 = tpu.matmul %45, %44, %cst_20 {dimension_numbers = #tpu.dot_dimension_numbers<[1], [0], [0], [1], [0, 0, 1, 1], [], []>} : vector<4x32xf32>, vector<32x2xf32>, vector<4x2xf32> -> vector<4x2xf32>
    %c0_21 = arith.constant 0 : index
    %c0_22 = arith.constant 0 : index
    %47 = vector.load %arg8[%c0_21, %c0_22] : memref<12x1xf32, #tpu.memory_space<vmem>>, vector<4x1xf32>
    %48 = vector.broadcast %47 : vector<4x1xf32> to vector<4x2xf32>
    %49 = arith.addf %46, %48 : vector<4x2xf32>
    %cst_23 = arith.constant dense<0xFF800000> : vector<2xf32>
    %50 = vector.multi_reduction <maximumf>, %49, %cst_23 [0] : vector<4x2xf32> to vector<2xf32>
    %51 = vector.shape_cast %50 : vector<2xf32> to vector<1x2xf32>
    %52 = vector.broadcast %51 : vector<1x2xf32> to vector<4x2xf32>
    %53 = arith.subf %49, %52 : vector<4x2xf32>
    %54 = math.exp %53 : vector<4x2xf32>
    %55 = vector.extract_strided_slice %8 {offsets = [32, 0], sizes = [32, 2], strides = [1, 1]} : vector<96x2xf32> to vector<32x2xf32>
    %cst_24 = arith.constant dense<0.000000e+00> : vector<2xf32>
    %56 = vector.multi_reduction <add>, %55, %cst_24 [0] : vector<32x2xf32> to vector<2xf32>
    %57 = vector.shape_cast %56 : vector<2xf32> to vector<1x2xf32>
    %cst_25 = arith.constant 3.200000e+01 : f32
    %58 = vector.broadcast %cst_25 : f32 to vector<1x2xf32>
    %59 = arith.divf %57, %58 : vector<1x2xf32>
    %60 = vector.broadcast %59 : vector<1x2xf32> to vector<32x2xf32>
    %61 = arith.subf %55, %60 : vector<32x2xf32>
    %62 = arith.mulf %61, %61 : vector<32x2xf32>
    %cst_26 = arith.constant dense<0.000000e+00> : vector<2xf32>
    %63 = vector.multi_reduction <add>, %62, %cst_26 [0] : vector<32x2xf32> to vector<2xf32>
    %64 = vector.shape_cast %63 : vector<2xf32> to vector<1x2xf32>
    %cst_27 = arith.constant 3.200000e+01 : f32
    %65 = vector.broadcast %cst_27 : f32 to vector<1x2xf32>
    %66 = arith.divf %64, %65 : vector<1x2xf32>
    %cst_28 = arith.constant 9.99999974E-6 : f32
    %67 = vector.broadcast %cst_28 : f32 to vector<1x2xf32>
    %68 = arith.addf %66, %67 : vector<1x2xf32>
    %69 = math.rsqrt %68 : vector<1x2xf32>
    %70 = vector.broadcast %69 : vector<1x2xf32> to vector<32x2xf32>
    %71 = arith.mulf %61, %70 : vector<32x2xf32>
    %72 = vector.extract_strided_slice %3 {offsets = [32, 0], sizes = [32, 1], strides = [1, 1]} : vector<96x1xf32> to vector<32x1xf32>
    %73 = vector.broadcast %72 : vector<32x1xf32> to vector<32x2xf32>
    %74 = arith.mulf %71, %73 : vector<32x2xf32>
    %75 = vector.extract_strided_slice %4 {offsets = [32, 0], sizes = [32, 1], strides = [1, 1]} : vector<96x1xf32> to vector<32x1xf32>
    %76 = vector.broadcast %75 : vector<32x1xf32> to vector<32x2xf32>
    %77 = arith.addf %74, %76 : vector<32x2xf32>
    %cst_29 = arith.constant 5.000000e-01 : f32
    %78 = vector.broadcast %cst_29 : f32 to vector<32x2xf32>
    %79 = arith.mulf %78, %77 : vector<32x2xf32>
    %cst_30 = arith.constant 4.471500e-02 : f32
    %80 = vector.broadcast %cst_30 : f32 to vector<32x2xf32>
    %81 = arith.mulf %80, %77 : vector<32x2xf32>
    %82 = arith.mulf %81, %77 : vector<32x2xf32>
    %83 = arith.mulf %82, %77 : vector<32x2xf32>
    %84 = arith.addf %77, %83 : vector<32x2xf32>
    %cst_31 = arith.constant 0.797884583 : f32
    %85 = vector.broadcast %cst_31 : f32 to vector<32x2xf32>
    %86 = arith.mulf %85, %84 : vector<32x2xf32>
    %87 = math.tanh %86 : vector<32x2xf32>
    %cst_32 = arith.constant 1.000000e+00 : f32
    %88 = vector.broadcast %cst_32 : f32 to vector<32x2xf32>
    %89 = arith.addf %88, %87 : vector<32x2xf32>
    %90 = arith.mulf %79, %89 : vector<32x2xf32>
    %c0_33 = arith.constant 0 : index
    %c0_34 = arith.constant 0 : index
    %91 = vector.load %arg6[%c0_33, %c0_34] : memref<4x32xf32, #tpu.memory_space<vmem>>, vector<4x32xf32>
    %cst_35 = arith.constant dense<0.000000e+00> : vector<4x2xf32>
    %92 = tpu.matmul %91, %90, %cst_35 {dimension_numbers = #tpu.dot_dimension_numbers<[1], [0], [0], [1], [0, 0, 1, 1], [], []>} : vector<4x32xf32>, vector<32x2xf32>, vector<4x2xf32> -> vector<4x2xf32>
    %c4 = arith.constant 4 : index
    %c0_36 = arith.constant 0 : index
    %93 = vector.load %arg8[%c4, %c0_36] : memref<12x1xf32, #tpu.memory_space<vmem>>, vector<4x1xf32>
    %94 = vector.broadcast %93 : vector<4x1xf32> to vector<4x2xf32>
    %95 = arith.addf %92, %94 : vector<4x2xf32>
    %cst_37 = arith.constant dense<0xFF800000> : vector<2xf32>
    %96 = vector.multi_reduction <maximumf>, %95, %cst_37 [0] : vector<4x2xf32> to vector<2xf32>
    %97 = vector.shape_cast %96 : vector<2xf32> to vector<1x2xf32>
    %98 = vector.broadcast %97 : vector<1x2xf32> to vector<4x2xf32>
    %99 = arith.subf %95, %98 : vector<4x2xf32>
    %100 = math.exp %99 : vector<4x2xf32>
    %101 = vector.extract_strided_slice %8 {offsets = [64, 0], sizes = [32, 2], strides = [1, 1]} : vector<96x2xf32> to vector<32x2xf32>
    %cst_38 = arith.constant dense<0.000000e+00> : vector<2xf32>
    %102 = vector.multi_reduction <add>, %101, %cst_38 [0] : vector<32x2xf32> to vector<2xf32>
    %103 = vector.shape_cast %102 : vector<2xf32> to vector<1x2xf32>
    %cst_39 = arith.constant 3.200000e+01 : f32
    %104 = vector.broadcast %cst_39 : f32 to vector<1x2xf32>
    %105 = arith.divf %103, %104 : vector<1x2xf32>
    %106 = vector.broadcast %105 : vector<1x2xf32> to vector<32x2xf32>
    %107 = arith.subf %101, %106 : vector<32x2xf32>
    %108 = arith.mulf %107, %107 : vector<32x2xf32>
    %cst_40 = arith.constant dense<0.000000e+00> : vector<2xf32>
    %109 = vector.multi_reduction <add>, %108, %cst_40 [0] : vector<32x2xf32> to vector<2xf32>
    %110 = vector.shape_cast %109 : vector<2xf32> to vector<1x2xf32>
    %cst_41 = arith.constant 3.200000e+01 : f32
    %111 = vector.broadcast %cst_41 : f32 to vector<1x2xf32>
    %112 = arith.divf %110, %111 : vector<1x2xf32>
    %cst_42 = arith.constant 9.99999974E-6 : f32
    %113 = vector.broadcast %cst_42 : f32 to vector<1x2xf32>
    %114 = arith.addf %112, %113 : vector<1x2xf32>
    %115 = math.rsqrt %114 : vector<1x2xf32>
    %116 = vector.broadcast %115 : vector<1x2xf32> to vector<32x2xf32>
    %117 = arith.mulf %107, %116 : vector<32x2xf32>
    %118 = vector.extract_strided_slice %3 {offsets = [64, 0], sizes = [32, 1], strides = [1, 1]} : vector<96x1xf32> to vector<32x1xf32>
    %119 = vector.broadcast %118 : vector<32x1xf32> to vector<32x2xf32>
    %120 = arith.mulf %117, %119 : vector<32x2xf32>
    %121 = vector.extract_strided_slice %4 {offsets = [64, 0], sizes = [32, 1], strides = [1, 1]} : vector<96x1xf32> to vector<32x1xf32>
    %122 = vector.broadcast %121 : vector<32x1xf32> to vector<32x2xf32>
    %123 = arith.addf %120, %122 : vector<32x2xf32>
    %cst_43 = arith.constant 5.000000e-01 : f32
    %124 = vector.broadcast %cst_43 : f32 to vector<32x2xf32>
    %125 = arith.mulf %124, %123 : vector<32x2xf32>
    %cst_44 = arith.constant 4.471500e-02 : f32
    %126 = vector.broadcast %cst_44 : f32 to vector<32x2xf32>
    %127 = arith.mulf %126, %123 : vector<32x2xf32>
    %128 = arith.mulf %127, %123 : vector<32x2xf32>
    %129 = arith.mulf %128, %123 : vector<32x2xf32>
    %130 = arith.addf %123, %129 : vector<32x2xf32>
    %cst_45 = arith.constant 0.797884583 : f32
    %131 = vector.broadcast %cst_45 : f32 to vector<32x2xf32>
    %132 = arith.mulf %131, %130 : vector<32x2xf32>
    %133 = math.tanh %132 : vector<32x2xf32>
    %cst_46 = arith.constant 1.000000e+00 : f32
    %134 = vector.broadcast %cst_46 : f32 to vector<32x2xf32>
    %135 = arith.addf %134, %133 : vector<32x2xf32>
    %136 = arith.mulf %125, %135 : vector<32x2xf32>
    %c0_47 = arith.constant 0 : index
    %c0_48 = arith.constant 0 : index
    %137 = vector.load %arg7[%c0_47, %c0_48] : memref<4x32xf32, #tpu.memory_space<vmem>>, vector<4x32xf32>
    %cst_49 = arith.constant dense<0.000000e+00> : vector<4x2xf32>
    %138 = tpu.matmul %137, %136, %cst_49 {dimension_numbers = #tpu.dot_dimension_numbers<[1], [0], [0], [1], [0, 0, 1, 1], [], []>} : vector<4x32xf32>, vector<32x2xf32>, vector<4x2xf32> -> vector<4x2xf32>
    %c8 = arith.constant 8 : index
    %c0_50 = arith.constant 0 : index
    %139 = vector.load %arg8[%c8, %c0_50] : memref<12x1xf32, #tpu.memory_space<vmem>>, vector<4x1xf32>
    %140 = vector.broadcast %139 : vector<4x1xf32> to vector<4x2xf32>
    %141 = arith.addf %138, %140 : vector<4x2xf32>
    %cst_51 = arith.constant dense<0xFF800000> : vector<2xf32>
    %142 = vector.multi_reduction <maximumf>, %141, %cst_51 [0] : vector<4x2xf32> to vector<2xf32>
    %143 = vector.shape_cast %142 : vector<2xf32> to vector<1x2xf32>
    %144 = vector.broadcast %143 : vector<1x2xf32> to vector<4x2xf32>
    %145 = arith.subf %141, %144 : vector<4x2xf32>
    %146 = math.exp %145 : vector<4x2xf32>
    %cst_52 = arith.constant 0.000000e+00 : f32
    %147 = vector.broadcast %cst_52 : f32 to vector<8x2xf32>
    %cst_53 = arith.constant 0.000000e+00 : f32
    %148 = vector.broadcast %cst_53 : f32 to vector<8x2xf32>
    %c0_i32 = arith.constant 0 : i32
    %149 = vector.broadcast %c0_i32 : i32 to vector<8x2xi32>
    %150 = arith.cmpi eq, %1, %149 : vector<8x2xi32>
    %151 = vector.extract_strided_slice %54 {offsets = [0, 0], sizes = [1, 2], strides = [1, 1]} : vector<4x2xf32> to vector<1x2xf32>
    %152 = vector.shape_cast %151 : vector<1x2xf32> to vector<1x2xf32>
    %153 = vector.broadcast %152 : vector<1x2xf32> to vector<8x2xf32>
    %154 = arith.select %150, %153, %147 : vector<8x2xi1>, vector<8x2xf32>
    %155 = vector.extract_strided_slice %100 {offsets = [0, 0], sizes = [1, 2], strides = [1, 1]} : vector<4x2xf32> to vector<1x2xf32>
    %156 = vector.shape_cast %155 : vector<1x2xf32> to vector<1x2xf32>
    %157 = vector.broadcast %156 : vector<1x2xf32> to vector<8x2xf32>
    %158 = arith.select %150, %157, %148 : vector<8x2xi1>, vector<8x2xf32>
    %c1_i32 = arith.constant 1 : i32
    %159 = vector.broadcast %c1_i32 : i32 to vector<8x2xi32>
    %160 = arith.cmpi eq, %1, %159 : vector<8x2xi32>
    %161 = vector.extract_strided_slice %54 {offsets = [1, 0], sizes = [1, 2], strides = [1, 1]} : vector<4x2xf32> to vector<1x2xf32>
    %162 = vector.shape_cast %161 : vector<1x2xf32> to vector<1x2xf32>
    %163 = vector.broadcast %162 : vector<1x2xf32> to vector<8x2xf32>
    %164 = arith.select %160, %163, %154 : vector<8x2xi1>, vector<8x2xf32>
    %165 = vector.extract_strided_slice %100 {offsets = [1, 0], sizes = [1, 2], strides = [1, 1]} : vector<4x2xf32> to vector<1x2xf32>
    %166 = vector.shape_cast %165 : vector<1x2xf32> to vector<1x2xf32>
    %167 = vector.broadcast %166 : vector<1x2xf32> to vector<8x2xf32>
    %168 = arith.select %160, %167, %158 : vector<8x2xi1>, vector<8x2xf32>
    %c2_i32 = arith.constant 2 : i32
    %169 = vector.broadcast %c2_i32 : i32 to vector<8x2xi32>
    %170 = arith.cmpi eq, %1, %169 : vector<8x2xi32>
    %171 = vector.extract_strided_slice %54 {offsets = [2, 0], sizes = [1, 2], strides = [1, 1]} : vector<4x2xf32> to vector<1x2xf32>
    %172 = vector.shape_cast %171 : vector<1x2xf32> to vector<1x2xf32>
    %173 = vector.broadcast %172 : vector<1x2xf32> to vector<8x2xf32>
    %174 = arith.select %170, %173, %164 : vector<8x2xi1>, vector<8x2xf32>
    %175 = vector.extract_strided_slice %100 {offsets = [2, 0], sizes = [1, 2], strides = [1, 1]} : vector<4x2xf32> to vector<1x2xf32>
    %176 = vector.shape_cast %175 : vector<1x2xf32> to vector<1x2xf32>
    %177 = vector.broadcast %176 : vector<1x2xf32> to vector<8x2xf32>
    %178 = arith.select %170, %177, %168 : vector<8x2xi1>, vector<8x2xf32>
    %c3_i32 = arith.constant 3 : i32
    %179 = vector.broadcast %c3_i32 : i32 to vector<8x2xi32>
    %180 = arith.cmpi eq, %1, %179 : vector<8x2xi32>
    %181 = vector.extract_strided_slice %54 {offsets = [3, 0], sizes = [1, 2], strides = [1, 1]} : vector<4x2xf32> to vector<1x2xf32>
    %182 = vector.shape_cast %181 : vector<1x2xf32> to vector<1x2xf32>
    %183 = vector.broadcast %182 : vector<1x2xf32> to vector<8x2xf32>
    %184 = arith.select %180, %183, %174 : vector<8x2xi1>, vector<8x2xf32>
    %185 = vector.extract_strided_slice %100 {offsets = [3, 0], sizes = [1, 2], strides = [1, 1]} : vector<4x2xf32> to vector<1x2xf32>
    %186 = vector.shape_cast %185 : vector<1x2xf32> to vector<1x2xf32>
    %187 = vector.broadcast %186 : vector<1x2xf32> to vector<8x2xf32>
    %188 = arith.select %180, %187, %178 : vector<8x2xi1>, vector<8x2xf32>
    %c0_54 = arith.constant 0 : index
    %c0_55 = arith.constant 0 : index
    %189 = vector.load %arg9[%c0_54, %c0_55] : memref<20x2xf32, #tpu.memory_space<vmem>>, vector<8x2xf32>
    tpu.vector_store %arg9[%c0_54, %c0_55], %184 {strides = array<i32>} : memref<20x2xf32, #tpu.memory_space<vmem>>, vector<8x2xf32>,
    %c8_56 = arith.constant 8 : index
    %c0_57 = arith.constant 0 : index
    %190 = vector.load %arg9[%c8_56, %c0_57] : memref<20x2xf32, #tpu.memory_space<vmem>>, vector<8x2xf32>
    tpu.vector_store %arg9[%c8_56, %c0_57], %188 {strides = array<i32>} : memref<20x2xf32, #tpu.memory_space<vmem>>, vector<8x2xf32>,
    %c16 = arith.constant 16 : index
    %c0_58 = arith.constant 0 : index
    %191 = vector.load %arg9[%c16, %c0_58] : memref<20x2xf32, #tpu.memory_space<vmem>>, vector<4x2xf32>
    tpu.vector_store %arg9[%c16, %c0_58], %146 {strides = array<i32>} : memref<20x2xf32, #tpu.memory_space<vmem>>, vector<4x2xf32>,
    return
  }
  func.func @transform_0(%arg0: i32) -> (i32, i32) {
    %c0_i32 = arith.constant 0 : i32
    %c0_i32_0 = arith.constant 0 : i32
    return %c0_i32, %arg0 : i32, i32
  }
  func.func @transform_1(%arg0: i32) -> (i32, i32) {
    %c0_i32 = arith.constant 0 : i32
    %c0_i32_0 = arith.constant 0 : i32
    return %c0_i32, %arg0 : i32, i32
  }
  func.func @transform_2(%arg0: i32) -> (i32, i32) {
    %c0_i32 = arith.constant 0 : i32
    %c0_i32_0 = arith.constant 0 : i32
    %c0_i32_1 = arith.constant 0 : i32
    return %c0_i32, %c0_i32_0 : i32, i32
  }
  func.func @transform_3(%arg0: i32) -> (i32, i32) {
    %c0_i32 = arith.constant 0 : i32
    %c0_i32_0 = arith.constant 0 : i32
    %c0_i32_1 = arith.constant 0 : i32
    return %c0_i32, %c0_i32_0 : i32, i32
  }
  func.func @transform_4(%arg0: i32) -> (i32, i32) {
    %c0_i32 = arith.constant 0 : i32
    %c0_i32_0 = arith.constant 0 : i32
    %c0_i32_1 = arith.constant 0 : i32
    return %c0_i32, %c0_i32_0 : i32, i32
  }
  func.func @transform_5(%arg0: i32) -> (i32, i32) {
    %c0_i32 = arith.constant 0 : i32
    %c0_i32_0 = arith.constant 0 : i32
    %c0_i32_1 = arith.constant 0 : i32
    return %c0_i32, %c0_i32_0 : i32, i32
  }
  func.func @transform_6(%arg0: i32) -> (i32, i32) {
    %c0_i32 = arith.constant 0 : i32
    %c0_i32_0 = arith.constant 0 : i32
    %c0_i32_1 = arith.constant 0 : i32
    return %c0_i32, %c0_i32_0 : i32, i32
  }
  func.func @transform_7(%arg0: i32) -> (i32, i32) {
    %c0_i32 = arith.constant 0 : i32
    %c0_i32_0 = arith.constant 0 : i32
    %c0_i32_1 = arith.constant 0 : i32
    return %c0_i32, %c0_i32_0 : i32, i32
  }
  func.func @transform_8(%arg0: i32) -> (i32, i32) {
    %c0_i32 = arith.constant 0 : i32
    %c0_i32_0 = arith.constant 0 : i32
    return %c0_i32, %arg0 : i32, i32
  }
}

</mosaic_0001>

<bundles_post_ra>
// kernel: tpu_custom_call.1
= control target key start
LH: loop header
LB: loop body
LE: loop exit
PB: predicated region body
PF: predicated region fallthrough
CT: control target
= control target key end

     0   :  { %vm118_vm0 = vcmask 261120   ;;  %v1149_v3 = vmov 0   ;;  %v1150_v31 = vmov 1   ;;  %v1151_v32 = vmov 2   ;;  %s1593_s0 = inlined_call_operand.vmem [shape: f32[32,2], index: 0, kind: input, shape index: {}]   ;;  %s1594_s2 = inlined_call_operand.vmem [shape: f32[96,32], index: 2, kind: input, shape index: {}]   ;;  %s1595_s3 = inlined_call_operand.vmem [shape: f32[96,3], index: 3, kind: input, shape index: {}]   ;;  %s1596_s7 = inlined_call_operand.vmem [shape: f32[12,1], index: 7, kind: input, shape index: {}]   ;;  %s1597_s4 = inlined_call_operand.vmem [shape: f32[4,32], index: 4, kind: input, shape index: {}]   ;;  %s1598_s5 = inlined_call_operand.vmem [shape: f32[4,32], index: 5, kind: input, shape index: {}]   ;;  %s1599_s6 = inlined_call_operand.vmem [shape: f32[4,32], index: 6, kind: input, shape index: {}]   ;;  %s1600_s1 = inlined_call_operand.vmem [shape: s32[8,2], index: 1, kind: input, shape index: {}]   ;;  %s1601_s8 = inlined_call_operand.vmem [shape: f32[20,2], index: 8, kind: output, shape index: {}]  }
   0x1   :  { %v29_v0 = vld [vmem:[%s1593_s0] sm:$0xff]  ;;  %v30_v1 = vld [vmem:[%s1593_s0 + $0x8] sm:$0xff]  ;;  %v31_v2 = vld [vmem:[%s1593_s0 + $0x10] sm:$0xff]  ;;  %1096 = vset.pattern.permute.xlu1 %v1149_v3  ;;  %1095 = vset.pattern.permute.xlu0 %v1149_v3  ;;  %v1152_v34 = vmov 0.0|0.0   ;;  %vm1153_vm1 = vmmov 0   ;;  %v1154_v37 = vmov 0.0  }
   0x2   :  { %v1063_v4 = vpack.c.bf16 %v30_v1, %v29_v0  ;;  %v32_v5 = vld [vmem:[%s1593_s0 + $0x18] sm:$0xff]  ;;  %v46_v6 = vld [vmem:[%s1594_s2] sm:$0xff]  ;;  %v36_v8 = vld [vmem:[%s1595_s3 + $0x10] sm:$0xff]  ;;  %1071 = vmatprep.subr.bf16.mxu1 %v1152_v34  ;;  %1038 = vmatprep.mubr.msk.f32.mxu1 %vm1153_vm1, %v1154_v37  ;;  %vm280_vm2 = vcmask 15360   ;;  %vm480_vm3 = vcmask 11264  }
   0x3   :  { %v1067_v7 = vpack.c.bf16 %v32_v5, %v31_v2  ;;  %1012 = vmatprep.mubr.msk.f32.mxu0 %vm118_vm0, %v46_v6  ;;  %v34_v9 = vld [vmem:[%s1595_s3] sm:$0xff]  ;;  %70 = vperm.xlu1 %1096, %v36_v8   ;;  %v37_v10 = vld [vmem:[%s1595_s3 + $0x18] sm:$0xff]  ;;  %v35_v11 = vld [vmem:[%s1595_s3 + $0x8] sm:$0xff] }
   0x4   :  { %1064 = vmatprep.subr.bf16.mxu0 %v1063_v4  ;;  %60 = vperm.xlu0 %1095, %v34_v9   ;;  %v47_v12 = vld [vmem:[%s1594_s2 + $0x8] sm:$0xff]  ;;  %v48_v13 = vld [vmem:[%s1594_s2 + $0x10] sm:$0xff]  ;;  %v38_v15 = vld [vmem:[%s1595_s3 + $0x20] sm:$0xff] }
   0x5   :  { %1066 = vmatpush3.bf16.msra.mxu0 %v1063_v4  ;;  %v39_v14 = vld [vmem:[%s1595_s3 + $0x28] sm:$0xff]  ;;  %v49_v16 = vld [vmem:[%s1594_s2 + $0x18] sm:$0xff]  ;;  %v50_v17 = vld [vmem:[%s1594_s2 + $0x20] sm:$0xff] }
   0x6   :  { %1068 = vmatprep.subr.bf16.mxu0 %v1067_v7  ;;  %v41_v18 = vld [vmem:[%s1595_s3 + $0x38] sm:$0xff]  ;;  %v40_v19 = vld [vmem:[%s1595_s3 + $0x30] sm:$0xff]  ;;  %v51_v20 = vld [vmem:[%s1594_s2 + $0x28] sm:$0xff] }
   0x7   :  { %75 = vperm.xlu1 %1096, %v37_v10   ;;  %v52_v21 = vld [vmem:[%s1594_s2 + $0x30] sm:$0xff]  ;;  %v43_v22 = vld [vmem:[%s1595_s3 + $0x48] sm:$0xff]  ;;  %v42_v23 = vld [vmem:[%s1595_s3 + $0x40] sm:$0xff] }
   0x8   :  { %65 = vperm.xlu0 %1095, %v35_v11   ;;  %v53_v24 = vld [vmem:[%s1594_s2 + $0x38] sm:$0xff]  ;;  %v54_v25 = vld [vmem:[%s1594_s2 + $0x40] sm:$0xff]  ;;  %v44_v27 = vld [vmem:[%s1595_s3 + $0x50] sm:$0xff] }
   0x9   :  { %1070 = vmatpush3.bf16.msra.mxu0 %v1067_v7  ;;  %v45_v26 = vld [vmem:[%s1595_s3 + $0x58] sm:$0xff]  ;;  %v55_v28 = vld [vmem:[%s1594_s2 + $0x48] sm:$0xff]  ;;  %v56_v29 = vld [vmem:[%s1594_s2 + $0x50] sm:$0xff] }
   0xa   :  { %v57_v30 = vld [vmem:[%s1594_s2 + $0x58] sm:$0xff]  ;;  %v401_v52 = vld [vmem:[%s1596_s7] sm:$0xf]  ;;  %v610_v53 = vld [vmem:[%s1596_s7 + $0x4] sm:$0xf] }
   0xb   :  { %85 = vperm.xlu1 %1096, %v39_v14   ;;  %v818_v58 = vld [vmem:[%s1596_s7 + $0x8] sm:$0xf] }
   0xc   :  { %1013 = vmatmul.mubr.msk.f32.vlgmr.msra.gmra.mrb[0].mxu0 %vm118_vm0, %v47_v12  ;;  %80 = vperm.xlu0 %1095, %v38_v15  }
   0xd   :  { %1015 = vmatprep.mubr.msk.f32.mxu0 %vm118_vm0, %v48_v13 }
   0xf   :  { %95 = vperm.xlu1 %1096, %v41_v18  }
  0x10   :  { %1016 = vmatmul.mubr.msk.f32.gmra.mrb[2].mxu0 %vm118_vm0, %v49_v16  ;;  %90 = vperm.xlu0 %1095, %v40_v19  }
  0x11   :  { %1018 = vmatprep.mubr.msk.f32.mxu0 %vm118_vm0, %v50_v17 }
  0x13   :  { %105 = vperm.xlu1 %1096, %v43_v22  }
  0x14   :  { %1019 = vmatmul.mubr.msk.f32.gmra.mrb[4].mxu0 %vm118_vm0, %v51_v20  ;;  %100 = vperm.xlu0 %1095, %v42_v23  }
  0x15   :  { %1021 = vmatprep.mubr.msk.f32.mxu0 %vm118_vm0, %v52_v21 }
  0x17   :  { %115 = vperm.xlu1 %1096, %v45_v26  }
  0x18   :  { %1022 = vmatmul.mubr.msk.f32.gmra.mrb[6].mxu0 %vm118_vm0, %v53_v24  ;;  %110 = vperm.xlu0 %1095, %v44_v27  }
  0x19   :  { %1024 = vmatprep.mubr.msk.f32.mxu0 %vm118_vm0, %v54_v25 }
  0x1b   :  { %1098 = vset.pattern.permute.xlu1 %v1150_v31 }
  0x1c   :  { %1025 = vmatmul.mubr.msk.f32.gmra.mrb[8].mxu0 %vm118_vm0, %v55_v28  ;;  %1097 = vset.pattern.permute.xlu0 %v1150_v31 }
  0x1d   :  { %1027 = vmatprep.mubr.msk.f32.mxu0 %vm118_vm0, %v56_v29  ;;  %329 = vperm.xlu1 %1098, %v35_v11  }
  0x1e   :  { %325 = vperm.xlu0 %1097, %v34_v9  }
  0x20   :  { %1028 = vmatmul.mubr.msk.f32.gmra.mrb[10].mxu0 %vm118_vm0, %v57_v30 }
  0x21   :  { %1099 = vset.pattern.permute.xlu1 %v1151_v32 }
  0x22   :  { %345 = vperm.xlu1 %1099, %v34_v9   ;;  %534 = vperm.xlu0 %1097, %v38_v15  }
  0x26   :  { %1100 = vset.pattern.permute.xlu1 %v1150_v31  ;;  %742 = vperm.xlu0 %1097, %v42_v23  }
  0x27   :  { %333 = vperm.xlu1 %1100, %v36_v8  }
  0x2a   :  { %1106 = vset.pattern.permute.xlu0 %v1151_v32 }
  0x2b   :  { %337 = vperm.xlu1 %1100, %v37_v10   ;;  %349 = vperm.xlu0 %1106, %v35_v11  }
  0x2f   :  { %1101 = vset.pattern.permute.xlu1 %v1151_v32  ;;  %353 = vperm.xlu0 %1106, %v36_v8  }
  0x30   :  { %357 = vperm.xlu1 %1101, %v37_v10  }
  0x33   :  { %558 = vperm.xlu0 %1106, %v39_v14  }
  0x34   :  { %1102 = vset.pattern.permute.xlu1 %v1150_v31 }
  0x35   :  { %538 = vperm.xlu1 %1102, %v39_v14  }
  0x37   :  { %562 = vperm.xlu0 %1106, %v40_v19  }
  0x39   :  { %1103 = vset.pattern.permute.xlu1 %v1151_v32 }
  0x3a   :  { %554 = vperm.xlu1 %1103, %v38_v15  }
  0x3b   :  { %766 = vperm.xlu0 %1106, %v43_v22  }
  0x3e   :  { %1104 = vset.pattern.permute.xlu1 %v1150_v31 }
  0x3f   :  { %542 = vperm.xlu1 %1104, %v40_v19   ;;  %770 = vperm.xlu0 %1106, %v44_v27  }
  0x43   :  { %546 = vperm.xlu1 %1104, %v41_v18   ;;  %1111 = vset.pattern.permute.xlu0 %v1149_v3 }
  0x44   :  { %404 = vperm.xlu0 %1111, %v401_v52  }
  0x47   :  { %1105 = vset.pattern.permute.xlu1 %v1151_v32 }
  0x48   :  { %566 = vperm.xlu1 %1105, %v41_v18  }
  0x4c   :  { %1107 = vset.pattern.permute.xlu1 %v1150_v31 }
  0x4d   :  { %746 = vperm.xlu1 %1107, %v43_v22  }
  0x51   :  { %1108 = vset.pattern.permute.xlu1 %v1151_v32 }
  0x52   :  { %762 = vperm.xlu1 %1108, %v42_v23  }
  0x56   :  { %1109 = vset.pattern.permute.xlu1 %v1150_v31 }
  0x57   :  { %750 = vperm.xlu1 %1109, %v44_v27  }
  0x5b   :  { %754 = vperm.xlu1 %1109, %v45_v26  }
  0x5f   :  { %1110 = vset.pattern.permute.xlu1 %v1151_v32 }
  0x60   :  { %774 = vperm.xlu1 %1110, %v45_v26  }
  0x64   :  { %1112 = vset.pattern.permute.xlu1 %v1149_v3 }
  0x65   :  { %613 = vperm.xlu1 %1112, %v610_v53  }
  0x69   :  { %821 = vperm.xlu1 %1112, %v818_v58  }
  0x82   :  { %v71_v33 = vpop.permute.xlu1 %70 }
  0x83   :  { %v61_v39 = vpop.permute.xlu0 %60 }
  0x86   :  { %v76_v35 = vpop.permute.xlu1 %75 }
  0x87   :  { %v66_v41 = vpop.permute.xlu0 %65 }
  0x8a   :  { %v86_v36 = vpop.permute.xlu1 %85 }
  0x8b   :  { %v81_v47 = vpop.permute.xlu0 %80 }
  0x8e   :  { %v96_v38 = vpop.permute.xlu1 %95 }
  0x8f   :  { %v91_v61 = vpop.permute.xlu0 %90 }
  0x92   :  { %v106_v40 = vpop.permute.xlu1 %105 }
  0x93   :  { %v101_v13 = vpop.permute.xlu0 %100 }
  0x96   :  { %v116_v42 = vpop.permute.xlu1 %115 }
  0x97   :  { %v111_v29 = vpop.permute.xlu0 %110 }
  0x9c   :  { %v1311_v51 = vpop.permute.xlu1 %329 }
  0xa1   :  { %v1328_v3 = vpop.permute.xlu1 %345 }
  0xa6   :  { %v1335_v17 = vpop.permute.xlu1 %333 }
  0xdf   :  { %v1014_v43 = vpop.f32.mrb[0].mxu0 }
  0xe0   :  { %v1303_v44 = vadd.f32 %v1014_v43, %v66_v41  ;;  %v221_v45 = vpop.f32.mrb[1].mxu0 }
  0xe1   :  { %v1305_v46 = vadd.f32 %v221_v45, %v61_v39 }
  0xe2   :  { %v282_v48 = vsel %vm280_vm2, %v1303_v44, 0.0 }
  0xe3   :  { %v281_v49 = vsel %vm280_vm2, %v1305_v46, 0.0  ;;  %v1017_v50 = vpop.f32.mrb[2].mxu0 }
  0xe4   :  { %v283_v54 = vadd.f32 %v282_v48, %v281_v49  ;;  %v231_v55 = vpop.f32.mrb[3].mxu0  ;;  %v237_v56 = vadd.f32 %v1017_v50, %v76_v35 }
  0xe5   :  { %v232_v57 = vadd.f32 %v231_v55, %v71_v33 }
  0xe6   :  { %v286_v1 = vsel %vm280_vm2, %v237_v56, 0.0 }
  0xe7   :  { %v284_v59 = vsel %vm280_vm2, %v232_v57, 0.0  ;;  %v1020_v60 = vpop.f32.mrb[4].mxu0 }
  0xe8   :  { %v285_v62 = vadd.f32 %v284_v59, %v283_v54  ;;  %v1323_v63 = vadd.f32 %v1020_v60, %v86_v36  ;;  %v241_v0 = vpop.f32.mrb[5].mxu0 }
  0xe9   :  { %v1326_v2 = vadd.f32 %v241_v0, %v81_v47 }
  0xea   :  { %v287_v4 = vadd.f32 %v286_v1, %v285_v62  ;;  %v492_v5 = vsel %vm280_vm2, %v1323_v63, 0.0 }
  0xeb   :  { %v491_v6 = vsel %vm280_vm2, %v1326_v2, 0.0  ;;  %v1023_v7 = vpop.f32.mrb[6].mxu0 }
  0xec   :  { %v288_v8 = vrot.slane %v287_v4, 4  ;;  %v493_v9 = vadd.f32 %v492_v5, %v491_v6  ;;  %v251_v10 = vpop.f32.mrb[7].mxu0  ;;  %v257_v11 = vadd.f32 %v1023_v7, %v96_v38  ;;  %v1346_v38 = vpop.permute.xlu1 %337 }
  0xed   :  { %v252_v12 = vadd.f32 %v251_v10, %v91_v61 }
  0xee   :  { %v289_v14 = vadd.f32 %v288_v8, %v287_v4  ;;  %v496_v22 = vsel %vm280_vm2, %v257_v11, 0.0 }
  0xef   :  { %v494_v15 = vsel %vm280_vm2, %v252_v12, 0.0  ;;  %v1026_v16 = vpop.f32.mrb[8].mxu0 }
  0xf0   :  { %v290_v18 = vrot.slane %v289_v14, 2  ;;  %v495_v19 = vadd.f32 %v494_v15, %v493_v9  ;;  %v1337_v20 = vadd.f32 %v1026_v16, %v106_v40  ;;  %v261_v21 = vpop.f32.mrb[9].mxu0  ;;  %v1350_v49 = vpop.permute.xlu1 %357 }
  0xf1   :  { %v1340_v23 = vadd.f32 %v261_v21, %v101_v13 }
  0xf2   :  { %v291_v24 = vadd.f32 %v290_v18, %v289_v14  ;;  %v497_v25 = vadd.f32 %v496_v22, %v495_v19  ;;  %v700_v26 = vsel %vm280_vm2, %v1337_v20, 0.0  ;;  %v1390_v22 = vpop.permute.xlu0 %325 }
  0xf3   :  { %v699_v27 = vsel %vm280_vm2, %v1340_v23, 0.0  ;;  %v1029_v28 = vpop.f32.mrb[10].mxu0 }
  0xf4   :  { %v292_v30 = vrot.slane %v291_v24, 1  ;;  %v498_v31 = vrot.slane %v497_v25, 4  ;;  %v701_v32 = vadd.f32 %v700_v26, %v699_v27  ;;  %v271_v33 = vpop.f32.mrb[11].mxu0  ;;  %v277_v35 = vadd.f32 %v1029_v28, %v116_v42  ;;  %v1372_v1 = vpop.permute.xlu1 %538 }
  0xf5   :  { %v272_v36 = vadd.f32 %v271_v33, %v111_v29 }
  0xf6   :  { %v293_v39 = vadd.f32 %v292_v30, %v291_v24  ;;  %v499_v40 = vadd.f32 %v498_v31, %v497_v25  ;;  %v704_v48 = vsel %vm280_vm2, %v277_v35, 0.0 }
  0xf7   :  { %v702_v41 = vsel %vm280_vm2, %v272_v36, 0.0 }
  0xf8   :  { %v295_v43 = vmul.f32 0.03125, %v293_v39  ;;  %v500_v45 = vrot.slane %v499_v40, 2  ;;  %v703_v47 = vadd.f32 %v702_v41, %v701_v32 }
  0xfa   :  { %v1352_v50 = vsub.f32 %v232_v57, %v295_v43  ;;  %v1354_v52 = vsub.f32 %v237_v56, %v295_v43  ;;  %v501_v53 = vadd.f32 %v500_v45, %v499_v40  ;;  %v1357_v42 = vsub.f32 %v1305_v46, %v295_v43  ;;  %v1409_v45 = vpop.permute.xlu0 %534 }
  0xfb   :  { %v1360_v54 = vsub.f32 %v1303_v44, %v295_v43  ;;  %v705_v55 = vadd.f32 %v704_v48, %v703_v47 }
  0xfc   :  { %v502_v58 = vrot.slane %v501_v53, 1  ;;  %v300_v59 = vmul.f32 %v1357_v42, %v1357_v42  ;;  %v302_v60 = vmul.f32 %v1352_v50, %v1352_v50  ;;  %v303_v46 = vmul.f32 %v1354_v52, %v1354_v52 }
  0xfd   :  { %v301_v57 = vmul.f32 %v1360_v54, %v1360_v54  ;;  %v706_v56 = vrot.slane %v705_v55, 4 }
  0xfe   :  { %v503_v61 = vadd.f32 %v502_v58, %v501_v53  ;;  %v304_v62 = vsel %vm280_vm2, %v300_v59, 0.0  ;;  %v307_v6 = vsel %vm280_vm2, %v302_v60, 0.0  ;;  %v309_v14 = vsel %vm280_vm2, %v303_v46, 0.0 }
  0xff   :  { %v305_v44 = vsel %vm280_vm2, %v301_v57, 0.0  ;;  %v707_v0 = vadd.f32 %v706_v56, %v705_v55 }
 0x100   :  { %v504_v4 = vmul.f32 0.03125, %v503_v61  ;;  %v306_v5 = vadd.f32 %v305_v44, %v304_v62  ;;  %v1427_v44 = vpop.permute.xlu0 %742 }
 0x101   :  { %v708_v7 = vrot.slane %v707_v0, 2 }
 0x102   :  { %v1376_v8 = vsub.f32 %v1323_v63, %v504_v4  ;;  %v1378_v9 = vsub.f32 %v252_v12, %v504_v4  ;;  %v1380_v10 = vsub.f32 %v257_v11, %v504_v4  ;;  %v308_v13 = vadd.f32 %v307_v6, %v306_v5  ;;  %v1394_v12 = vpop.permute.xlu1 %554 }
 0x103   :  { %v709_v15 = vadd.f32 %v708_v7, %v707_v0  ;;  %v1384_v16 = vsub.f32 %v1326_v2, %v504_v4 }
 0x104   :  { %v310_v18 = vadd.f32 %v309_v14, %v308_v13  ;;  %v510_v19 = vmul.f32 %v1376_v8, %v1376_v8  ;;  %v511_v21 = vmul.f32 %v1378_v9, %v1378_v9  ;;  %v512_v2 = vmul.f32 %v1380_v10, %v1380_v10 }
 0x105   :  { %v710_v63 = vrot.slane %v709_v15, 1  ;;  %v509_v11 = vmul.f32 %v1384_v16, %v1384_v16 }
 0x106   :  { %v311_v24 = vrot.slane %v310_v18, 4  ;;  %v514_v25 = vsel %vm280_vm2, %v510_v19, 0.0  ;;  %v516_v30 = vsel %vm280_vm2, %v511_v21, 0.0  ;;  %v518_v39 = vsel %vm280_vm2, %v512_v2, 0.0  ;;  %v1414_v48 = vpop.permute.xlu1 %542 }
 0x107   :  { %v711_v26 = vadd.f32 %v710_v63, %v709_v15  ;;  %v513_v27 = vsel %vm280_vm2, %v509_v11, 0.0  ;;  %v350_v63 = vpop.permute.xlu0 %349 }
 0x108   :  { %v312_v28 = vadd.f32 %v311_v24, %v310_v18  ;;  %v515_v29 = vadd.f32 %v514_v25, %v513_v27 }
 0x109   :  { %v712_v31 = vmul.f32 0.03125, %v711_v26 }
 0x10a   :  { %v313_v32 = vrot.slane %v312_v28, 2  ;;  %v517_v33 = vadd.f32 %v516_v30, %v515_v29  ;;  %v1429_v0 = vpop.permute.xlu1 %546 }
 0x10b   :  { %v1403_v40 = vsub.f32 %v1337_v20, %v712_v31  ;;  %v1405_v41 = vsub.f32 %v272_v36, %v712_v31  ;;  %v1407_v43 = vsub.f32 %v277_v35, %v712_v31  ;;  %v1412_v47 = vsub.f32 %v1340_v23, %v712_v31  ;;  %v354_v29 = vpop.permute.xlu0 %353 }
 0x10c   :  { %v314_v53 = vadd.f32 %v313_v32, %v312_v28  ;;  %v519_v55 = vadd.f32 %v518_v39, %v517_v33 }
 0x10d   :  { %v719_v58 = vmul.f32 %v1405_v41, %v1405_v41  ;;  %v717_v20 = vmul.f32 %v1412_v47, %v1412_v47  ;;  %v718_v36 = vmul.f32 %v1403_v40, %v1403_v40  ;;  %v720_v60 = vmul.f32 %v1407_v43, %v1407_v43 }
 0x10e   :  { %v315_v35 = vrot.slane %v314_v53, 1  ;;  %v520_v59 = vrot.slane %v519_v55, 4  ;;  %v567_v18 = vpop.permute.xlu1 %566 }
 0x10f   :  { %v721_v23 = vsel %vm280_vm2, %v717_v20, 0.0  ;;  %v722_v57 = vsel %vm280_vm2, %v718_v36, 0.0  ;;  %v724_v46 = vsel %vm280_vm2, %v719_v58, 0.0  ;;  %v726_v7 = vsel %vm280_vm2, %v720_v60, 0.0 }
 0x110   :  { %v316_v56 = vadd.f32 %v315_v35, %v314_v53  ;;  %v521_v61 = vadd.f32 %v520_v59, %v519_v55  ;;  %v723_v62 = vadd.f32 %v722_v57, %v721_v23  ;;  %v559_v23 = vpop.permute.xlu0 %558 }
 0x112   :  { %v317_v4 = vmul.f32 0.03125, %v316_v56  ;;  %v522_v5 = vrot.slane %v521_v61, 2  ;;  %v725_v6 = vadd.f32 %v724_v46, %v723_v62  ;;  %v1432_v26 = vpop.permute.xlu1 %746 }
 0x114   :  { %v318_v13 = vadd.f32 1e-05, %v317_v4  ;;  %v523_v14 = vadd.f32 %v522_v5, %v521_v61  ;;  %v727_v15 = vadd.f32 %v726_v7, %v725_v6  ;;  %v563_v4 = vpop.permute.xlu0 %562 }
 0x116   :  { %1113 = vrsqrt.f32 %v318_v13  ;;  %v524_v19 = vrot.slane %v523_v14, 1  ;;  %v728_v21 = vrot.slane %v727_v15, 4  ;;  %v1438_v58 = vpop.permute.xlu1 %762 }
 0x118   :  { %v525_v11 = vadd.f32 %v524_v19, %v523_v14  ;;  %v729_v24 = vadd.f32 %v728_v21, %v727_v15 }
 0x11a   :  { %v526_v2 = vmul.f32 0.03125, %v525_v11  ;;  %v730_v25 = vrot.slane %v729_v24, 2 }
 0x11c   :  { %v527_v27 = vadd.f32 1e-05, %v526_v2  ;;  %v731_v28 = vadd.f32 %v730_v25, %v729_v24 }
 0x11e   :  { %1115 = vrsqrt.f32 %v527_v27  ;;  %v732_v30 = vrot.slane %v731_v28, 1  ;;  %v767_v27 = vpop.permute.xlu0 %766 }
 0x120   :  { %v1114_v31 = vpop.eup %1113  ;;  %v733_v32 = vadd.f32 %v732_v30, %v731_v28 }
 0x121   :  { %v321_v33 = vmul.f32 %v1114_v31, %v1360_v54  ;;  %v322_v39 = vmul.f32 %v1114_v31, %v1352_v50  ;;  %v323_v53 = vmul.f32 %v1114_v31, %v1354_v52  ;;  %v320_v55 = vmul.f32 %v1114_v31, %v1357_v42 }
 0x122   :  { %v734_v20 = vmul.f32 0.03125, %v733_v32 }
 0x123   :  { %v341_v36 = vmul.f32 %v1311_v51, %v321_v33  ;;  %v342_v35 = vmul.f32 %v1335_v17, %v322_v39  ;;  %v343_v59 = vmul.f32 %v1346_v38, %v323_v53  ;;  %v340_v60 = vmul.f32 %v1390_v22, %v320_v55  ;;  %v751_v22 = vpop.permute.xlu1 %750 }
 0x124   :  { %v735_v57 = vadd.f32 1e-05, %v734_v20 }
 0x125   :  { %v1445_v54 = vadd.f32 %v1328_v3, %v340_v60  ;;  %v1448_v50 = vadd.f32 %v1350_v49, %v343_v59  ;;  %v1450_v52 = vadd.f32 %v350_v63, %v341_v36  ;;  %v1452_v42 = vadd.f32 %v354_v29, %v342_v35 }
 0x126   :  { %1117 = vrsqrt.f32 %v735_v57 }
 0x127   :  { %v368_v51 = vmul.f32 0.044715, %v1445_v54  ;;  %v371_v17 = vmul.f32 0.044715, %v1448_v50  ;;  %v369_v38 = vmul.f32 0.044715, %v1450_v52  ;;  %v755_v24 = vpop.permute.xlu1 %754 }
 0x128   :  { %v1116_v56 = vpop.eup %1115  ;;  %v370_v61 = vmul.f32 0.044715, %v1452_v42 }
 0x129   :  { %v375_v3 = vmul.f32 %v371_v17, %v1448_v50  ;;  %v529_v49 = vmul.f32 %v1116_v56, %v1384_v16  ;;  %v530_v62 = vmul.f32 %v1116_v56, %v1376_v8  ;;  %v373_v46 = vmul.f32 %v369_v38, %v1450_v52 }
 0x12a   :  { %v531_v5 = vmul.f32 %v1116_v56, %v1378_v9  ;;  %v374_v6 = vmul.f32 %v370_v61, %v1452_v42  ;;  %v532_v7 = vmul.f32 %v1116_v56, %v1380_v10  ;;  %v372_v13 = vmul.f32 %v368_v51, %v1445_v54 }
 0x12b   :  { %v379_v14 = vmul.f32 %v375_v3, %v1448_v50  ;;  %v549_v15 = vmul.f32 %v1409_v45, %v529_v49  ;;  %v550_v19 = vmul.f32 %v1372_v1, %v530_v62  ;;  %v377_v16 = vmul.f32 %v373_v46, %v1450_v52  ;;  %v775_v51 = vpop.permute.xlu1 %774 }
 0x12c   :  { %v551_v8 = vmul.f32 %v1414_v48, %v531_v5  ;;  %v378_v21 = vmul.f32 %v374_v6, %v1452_v42  ;;  %v552_v9 = vmul.f32 %v1429_v0, %v532_v7  ;;  %v376_v63 = vmul.f32 %v372_v13, %v1445_v54 }
 0x12d   :  { %v1475_v10 = vadd.f32 %v1394_v12, %v549_v15  ;;  %v1477_v11 = vadd.f32 %v559_v23, %v550_v19  ;;  %v381_v45 = vadd.f32 %v377_v16, %v1450_v52  ;;  %v383_v33 = vadd.f32 %v379_v14, %v1448_v50 }
 0x12e   :  { %v1480_v2 = vadd.f32 %v563_v4, %v551_v8  ;;  %v1482_v1 = vadd.f32 %v567_v18, %v552_v9  ;;  %v380_v48 = vadd.f32 %v376_v63, %v1445_v54  ;;  %v382_v12 = vadd.f32 %v378_v21, %v1452_v42 }
 0x12f   :  { %v577_v25 = vmul.f32 0.044715, %v1475_v10  ;;  %v578_v0 = vmul.f32 0.044715, %v1477_v11  ;;  %v385_v28 = vmul.f32 0.7978846, %v381_v45 }
 0x130   :  { %v1118_v29 = vpop.eup %1117  ;;  %v579_v30 = vmul.f32 0.044715, %v1480_v2  ;;  %v580_v31 = vmul.f32 0.044715, %v1482_v1  ;;  %v384_v32 = vmul.f32 0.7978846, %v380_v48 }
 0x131   :  { %v737_v18 = vmul.f32 %v1118_v29, %v1412_v47  ;;  %v581_v39 = vmul.f32 %v577_v25, %v1475_v10  ;;  %v582_v53 = vmul.f32 %v578_v0, %v1477_v11  ;;  %v738_v55 = vmul.f32 %v1118_v29, %v1403_v40 }
 0x132   :  { %v583_v20 = vmul.f32 %v579_v30, %v1480_v2  ;;  %v584_v36 = vmul.f32 %v580_v31, %v1482_v1  ;;  %v739_v35 = vmul.f32 %v1118_v29, %v1405_v41  ;;  %v740_v59 = vmul.f32 %v1118_v29, %v1407_v43 }
 0x133   :  { %v757_v60 = vmul.f32 %v1427_v44, %v737_v18  ;;  %v585_v23 = vmul.f32 %v581_v39, %v1475_v10  ;;  %v586_v47 = vmul.f32 %v582_v53, %v1477_v11  ;;  %v758_v57 = vmul.f32 %v1432_v26, %v738_v55  ;;  %v771_v44 = vpop.permute.xlu0 %770 }
 0x134   :  { %v587_v17 = vmul.f32 %v583_v20, %v1480_v2  ;;  %v588_v40 = vmul.f32 %v584_v36, %v1482_v1  ;;  %v759_v38 = vmul.f32 %v751_v22, %v739_v35  ;;  %v760_v56 = vmul.f32 %v755_v24, %v740_v59 }
 0x135   :  { %v589_v61 = vadd.f32 %v585_v23, %v1475_v10  ;;  %v590_v41 = vadd.f32 %v586_v47, %v1477_v11  ;;  %v1507_v43 = vadd.f32 %v767_v27, %v758_v57  ;;  %v1510_v3 = vadd.f32 %v1438_v58, %v757_v60 }
 0x136   :  { %v591_v49 = vadd.f32 %v587_v17, %v1480_v2  ;;  %v592_v26 = vadd.f32 %v588_v40, %v1482_v1  ;;  %v1514_v62 = vadd.f32 %v771_v44, %v759_v38  ;;  %v1516_v46 = vadd.f32 %v775_v51, %v760_v56 }
 0x137   :  { %v593_v22 = vmul.f32 0.7978846, %v589_v61  ;;  %v594_v4 = vmul.f32 0.7978846, %v590_v41  ;;  %v786_v5 = vmul.f32 0.044715, %v1507_v43  ;;  %1119 = vtanh.f32 %v384_v32 }
 0x138   :  { %v595_v6 = vmul.f32 0.7978846, %v591_v49  ;;  %v596_v7 = vmul.f32 0.7978846, %v592_v26  ;;  %v785_v13 = vmul.f32 0.044715, %v1510_v3  ;;  %1121 = vtanh.f32 %v385_v28 }
 0x139   :  { %1123 = vtanh.f32 %v593_v22  ;;  %v790_v58 = vmul.f32 %v786_v5, %v1507_v43  ;;  %v787_v14 = vmul.f32 0.044715, %v1514_v62  ;;  %v788_v15 = vmul.f32 0.044715, %v1516_v46 }
 0x13a   :  { %1125 = vtanh.f32 %v594_v4  ;;  %v789_v19 = vmul.f32 %v785_v13, %v1510_v3  ;;  %v386_v16 = vmul.f32 0.7978846, %v382_v12  ;;  %v387_v8 = vmul.f32 0.7978846, %v383_v33 }
 0x13b   :  { %1127 = vtanh.f32 %v595_v6  ;;  %v794_v21 = vmul.f32 %v790_v58, %v1507_v43  ;;  %v791_v9 = vmul.f32 %v787_v14, %v1514_v62  ;;  %v792_v63 = vmul.f32 %v788_v15, %v1516_v46 }
 0x13c   :  { %1129 = vtanh.f32 %v596_v7  ;;  %v793_v24 = vmul.f32 %v789_v19, %v1510_v3  ;;  %v364_v18 = vmul.f32 0.5, %v1445_v54  ;;  %v365_v55 = vmul.f32 0.5, %v1450_v52 }
 0x13d   :  { %v798_v45 = vadd.f32 %v794_v21, %v1507_v43  ;;  %v795_v48 = vmul.f32 %v791_v9, %v1514_v62  ;;  %v796_v25 = vmul.f32 %v792_v63, %v1516_v46  ;;  %1131 = vtanh.f32 %v386_v16 }
 0x13e   :  { %v797_v0 = vadd.f32 %v793_v24, %v1510_v3  ;;  %1133 = vtanh.f32 %v387_v8  ;;  %v573_v59 = vmul.f32 0.5, %v1475_v10  ;;  %v574_v57 = vmul.f32 0.5, %v1477_v11 }
 0x13f   :  { %v799_v27 = vadd.f32 %v795_v48, %v1514_v62  ;;  %v800_v28 = vadd.f32 %v796_v25, %v1516_v46  ;;  %v802_v29 = vmul.f32 0.7978846, %v798_v45  ;;  %v575_v40 = vmul.f32 0.5, %v1480_v2 }
 0x140   :  { %v801_v12 = vmul.f32 0.7978846, %v797_v0  ;;  %v576_v41 = vmul.f32 0.5, %v1482_v1  ;;  %v366_v49 = vmul.f32 0.5, %v1452_v42  ;;  %v367_v11 = vmul.f32 0.5, %v1448_v50 }
 0x141   :  { %v1120_v30 = vpop.eup %1119  ;;  %v804_v31 = vmul.f32 0.7978846, %v800_v28  ;;  %v803_v32 = vmul.f32 0.7978846, %v799_v27  ;;  %v781_v15 = vmul.f32 0.5, %v1510_v3  ;;  %v784_v16 = vmul.f32 0.5, %v1516_v46  ;;  %v405_v28 = vpop.permute.xlu0 %404 }
 0x142   :  { %v1122_v33 = vpop.eup %1121  ;;  %1135 = vtanh.f32 %v801_v12  ;;  %v392_v39 = vadd.f32 1.0, %v1120_v30  ;;  %v400_v50 = vld [vmem:[%s1597_s4] sm:$0xf]  ;;  %v782_v9 = vmul.f32 0.5, %v1507_v43  ;;  %v783_v45 = vmul.f32 0.5, %v1514_v62 }
 0x143   :  { %v1124_v53 = vpop.eup %1123  ;;  %1137 = vtanh.f32 %v804_v31  ;;  %v393_v20 = vadd.f32 1.0, %v1122_v33  ;;  %v609_v27 = vld [vmem:[%s1598_s5] sm:$0xf] }
 0x144   :  { %v1126_v36 = vpop.eup %1125  ;;  %v396_v35 = vmul.f32 %v392_v39, %v364_v18  ;;  %v601_v60 = vadd.f32 1.0, %v1124_v53  ;;  %1139 = vtanh.f32 %v802_v29  ;;  %v817_v62 = vld [vmem:[%s1599_s6] sm:$0xf] }
 0x145   :  { %v1128_v23 = vpop.eup %1127  ;;  %v397_v47 = vmul.f32 %v393_v20, %v365_v55  ;;  %v602_v51 = vadd.f32 1.0, %v1126_v36  ;;  %1141 = vtanh.f32 %v803_v32 }
 0x146   :  { %v1130_v17 = vpop.eup %1129  ;;  %v605_v54 = vmul.f32 %v601_v60, %v573_v59  ;;  %v603_v38 = vadd.f32 1.0, %v1128_v23 }
 0x147   :  { %v1132_v56 = vpop.eup %1131  ;;  %v1072_v52 = vpack.c.bf16 %v397_v47, %v396_v35  ;;  %v606_v61 = vmul.f32 %v602_v51, %v574_v57  ;;  %v604_v44 = vadd.f32 1.0, %v1130_v17 }
 0x148   :  { %v1134_v10 = vpop.eup %1133  ;;  %v394_v26 = vadd.f32 1.0, %v1132_v56  ;;  %v607_v22 = vmul.f32 %v603_v38, %v575_v40 }
 0x149   :  { %1073 = vmatpush3.bf16.msra.mxu1 %v1072_v52  ;;  %v395_v4 = vadd.f32 1.0, %v1134_v10  ;;  %v1078_v5 = vpack.c.bf16 %v606_v61, %v605_v54  ;;  %v608_v6 = vmul.f32 %v604_v44, %v576_v41  ;;  %v908_v52 = vlaneseq }
 0x14a   :  { %1074 = vmatprep.subr.bf16.mxu1 %v1152_v34  ;;  %v398_v2 = vmul.f32 %v394_v26, %v366_v49 }
 0x14b   :  { %v399_v7 = vmul.f32 %v395_v4, %v367_v11  ;;  %v1081_v13 = vpack.c.bf16 %v608_v6, %v607_v22  ;;  %v909_v49 = vshrl.u32 %v908_v52, 7 }
 0x14c   :  { %v1136_v58 = vpop.eup %1135 }
 0x14d   :  { %v1138_v14 = vpop.eup %1137  ;;  %v1075_v1 = vpack.c.bf16 %v399_v7, %v398_v2  ;;  %v809_v19 = vadd.f32 1.0, %v1136_v58  ;;  %v910_v6 = vsub.s32 0, %v909_v49  ;;  %v921_v2 = vsub.s32 1, %v909_v49 }
 0x14e   :  { %v1140_v42 = vpop.eup %1139  ;;  %v812_v8 = vadd.f32 1.0, %v1138_v14 }
 0x14f   :  { %v1142_v21 = vpop.eup %1141  ;;  %1076 = vmatpush3.bf16.msra.mxu1 %v1075_v1  ;;  %v810_v63 = vadd.f32 1.0, %v1140_v42  ;;  %v813_v24 = vmul.f32 %v809_v19, %v781_v15  ;;  %v943_v1 = vsub.s32 3, %v909_v49 }
 0x150   :  { %1077 = vmatprep.subr.bf16.mxu1 %v1152_v34  ;;  %v811_v3 = vadd.f32 1.0, %v1142_v21  ;;  %v816_v48 = vmul.f32 %v812_v8, %v784_v16 }
 0x151   :  { %v814_v25 = vmul.f32 %v810_v63, %v782_v9 }
 0x152   :  { %1039 = vmatmul.mubr.msk.f32.vlgmr.msra.gmra.mrb[0].mxu1 %vm118_vm0, %v400_v50  ;;  %v815_v46 = vmul.f32 %v811_v3, %v783_v45 }
 0x153   :  { %1079 = vmatpush3.bf16.msra.mxu1 %v1078_v5  ;;  %1049 = vmatprep.mubr.msk.f32.mxu1 %vm1153_vm1, %v1154_v37  ;;  %v1084_v0 = vpack.c.bf16 %v814_v25, %v813_v24  ;;  %v33_v5 = vld [vmem:[%s1600_s1] sm:$0xff] }
 0x154   :  { %1080 = vmatprep.subr.bf16.mxu1 %v1152_v34  ;;  %v1087_v43 = vpack.c.bf16 %v816_v48, %v815_v46  ;;  %vm907_vm4 = vcmp.eq.s32.totalorder %v33_v5, 0  ;;  %vm918_vm5 = vcmp.eq.s32.totalorder %v33_v5, 1  ;;  %vm929_vm6 = vcmp.eq.s32.totalorder %v33_v5, 2 }
 0x155   :  { %vm940_vm7 = vcmp.eq.s32.totalorder %v33_v5, 3 }
 0x157   :  { %1082 = vmatpush3.bf16.msra.mxu1 %v1081_v13  ;;  %v932_v13 = vsub.s32 2, %v909_v49 }
 0x158   :  { %1083 = vmatprep.subr.bf16.mxu1 %v1152_v34 }
 0x15a   :  { %1050 = vmatmul.mubr.msk.f32.vlgmr.msra.gmra.mrb[2].mxu1 %vm118_vm0, %v609_v27 }
 0x15b   :  { %1085 = vmatpush3.bf16.msra.mxu1 %v1084_v0  ;;  %1060 = vmatprep.mubr.msk.f32.mxu1 %vm1153_vm1, %v1154_v37  ;;  %v614_v37 = vpop.permute.xlu1 %613 }
 0x15c   :  { %1086 = vmatprep.subr.bf16.mxu1 %v1152_v34 }
 0x15f   :  { %1088 = vmatpush3.bf16.msra.mxu1 %v1087_v43  ;;  %v822_v57 = vpop.permute.xlu1 %821 }
 0x162   :  { %1061 = vmatmul.mubr.msk.f32.vlgmr.msra.gmra.mrb[4].mxu1 %vm118_vm0, %v817_v62 }
 0x225   :  { %v476_v12 = vpop.f32.mrb[0].mxu1 }
 0x226   :  { %v477_v29 = vadd.f32 %v476_v12, %v405_v28  ;;  %v1040_v30 = vpop.f32.mrb[1].mxu1 }
 0x228   :  { %v481_v31 = vsel %vm480_vm3, %v477_v29, -inf }
 0x229   :  { %v482_v32 = vrot.slane %v481_v31, 4 }
 0x22b   :  { %v483_v33 = vmax.f32 %v481_v31, %v482_v32 }
 0x22d   :  { %v484_v18 = vrot.slane %v483_v33, 2  ;;  %v685_v39 = vpop.f32.mrb[2].mxu1 }
 0x22e   :  { %v686_v34 = vadd.f32 %v685_v39, %v614_v37  ;;  %v1051_v53 = vpop.f32.mrb[3].mxu1 }
 0x22f   :  { %v485_v55 = vmax.f32 %v483_v33, %v484_v18 }
 0x230   :  { %v689_v20 = vsel %vm480_vm3, %v686_v34, -inf }
 0x231   :  { %v486_v36 = vrot.slane %v485_v55, 1  ;;  %v690_v35 = vrot.slane %v689_v20, 4 }
 0x233   :  { %v487_v59 = vmax.f32 %v485_v55, %v486_v36  ;;  %v691_v60 = vmax.f32 %v689_v20, %v690_v35 }
 0x235   :  { %v488_v23 = vsub.f32 %v477_v29, %v487_v59  ;;  %v692_v47 = vrot.slane %v691_v60, 2  ;;  %v893_v51 = vpop.f32.mrb[4].mxu1 }
 0x236   :  { %v894_v17 = vadd.f32 %v893_v51, %v822_v57  ;;  %v1062_v54 = vpop.f32.mrb[5].mxu1 }
 0x237   :  { %v489_v40 = vmul.f32 1.442695, %v488_v23  ;;  %v693_v38 = vmax.f32 %v691_v60, %v692_v47 }
 0x238   :  { %v897_v56 = vsel %vm480_vm3, %v894_v17, -inf }
 0x239   :  { %1143 = vpow2.f32 %v489_v40  ;;  %v694_v61 = vrot.slane %v693_v38, 1  ;;  %v898_v41 = vrot.slane %v897_v56, 4 }
 0x23b   :  { %v695_v44 = vmax.f32 %v693_v38, %v694_v61  ;;  %v899_v10 = vmax.f32 %v897_v56, %v898_v41 }
 0x23d   :  { %v696_v26 = vsub.f32 %v686_v34, %v695_v44  ;;  %v900_v22 = vrot.slane %v899_v10, 2 }
 0x23f   :  { %v697_v11 = vmul.f32 1.442695, %v696_v26  ;;  %v901_v4 = vmax.f32 %v899_v10, %v900_v22 }
 0x241   :  { %1145 = vpow2.f32 %v697_v11  ;;  %v902_v7 = vrot.slane %v901_v4, 1 }
 0x243   :  { %v1144_v58 = vpop.eup %1143  ;;  %v903_v14 = vmax.f32 %v901_v4, %v902_v7 }
 0x244   :  { %v911_v15 = vrot.slane %v1144_v58, %v910_v6  ;;  %v922_v19 = vrot.slane %v1144_v58, %v921_v2  ;;  %v933_v8 = vrot.slane %v1144_v58, %v932_v13  ;;  %v944_v9 = vrot.slane %v1144_v58, %v943_v1 }
 0x245   :  { %v904_v42 = vsub.f32 %v894_v17, %v903_v14 }
 0x246   :  { %v912_v16 = vsel %vm907_vm4, %v911_v15, 0.0 }
 0x247   :  { %v905_v21 = vmul.f32 1.442695, %v904_v42  ;;  %v923_v50 = vsel %vm918_vm5, %v922_v19, %v912_v16 }
 0x248   :  { %v934_v63 = vsel %vm929_vm6, %v933_v8, %v923_v50 }
 0x249   :  { %1147 = vpow2.f32 %v905_v21  ;;  %v945_v24 = vsel %vm940_vm7, %v944_v9, %v934_v63 }
 0x24a   :  { %951 = vst.msk [vmem:[%s1601_s8] sm:$0xff] %vm280_vm2, %v945_v24 }
 0x24b   :  { %v1146_v45 = vpop.eup %1145 }
 0x24c   :  { %v916_v3 = vrot.slane %v1146_v45, %v910_v6  ;;  %v927_v48 = vrot.slane %v1146_v45, %v921_v2  ;;  %v938_v46 = vrot.slane %v1146_v45, %v932_v13  ;;  %v949_v43 = vrot.slane %v1146_v45, %v943_v1 }
 0x24e   :  { %v917_v25 = vsel %vm907_vm4, %v916_v3, 0.0 }
 0x24f   :  { %v928_v0 = vsel %vm918_vm5, %v927_v48, %v917_v25 }
 0x250   :  { %v939_v27 = vsel %vm929_vm6, %v938_v46, %v928_v0 }
 0x251   :  { %v950_v62 = vsel %vm940_vm7, %v949_v43, %v939_v27 }
 0x252   :  { %952 = vst.msk [vmem:[%s1601_s8 + $0x8] sm:$0xff] %vm280_vm2, %v950_v62 }
 0x253   :  { %v1148_v28 = vpop.eup %1147 }
 0x254   :  { %953 = vst.msk [vmem:[%s1601_s8 + $0x10] sm:$0xf] %vm480_vm3, %v1148_v28 }

</bundles_post_ra>
